<compile_context>
chip_gen: v7x
topology: tpu7x:2x2x1
jax: 0.10.0
libtpu: 0.0.40
codegen_flags: <defaults>
</compile_context>

<pallas_src>
import jax
import jax.numpy as jnp
import numpy as np
from jax.experimental import pallas as pl
from jax.experimental.pallas import tpu as pltpu

F1 = 2              # self.f1  (the .view() calls also force T == 2 and B == 2)
NH = 10             # self.f2  (number of per-head k/q/v linears)
C = 2 * F1          # nn.Linear(4, 4, bias=False) feature width
LANE = 128          # TPU lane width; fused-weight output is 2 lane-tiles
W_LANES = 2 * LANE
U_OFF = 16          # intra-tile lane offset of the per-head 4-lane groups
MAX_TILE = 256      # samples per grid step (sublane dim of the fused matmul)


def _round_up(x, m):
    return (x + m - 1) // m * m


def head_kernel(x_ref, w_ref, seg_ref, o0_ref, o1_ref):
    """One grid step = a block of TS independent `idy` samples (8 input floats each).

    x_ref  : (TS, 8)      per-sample [row0 | row1] of idy.view(2, 4)
    w_ref  : (8, 256)     fused constant weight (see pack_weights)
    seg_ref: (128, NH)    constant 0/1 segment-sum matrix (per-head sum over C=4 lanes)
    o0_ref : (TS, NH)     output time-step 0 of every sample (== per-head sum of v row 0)
    o1_ref : (TS, NH)     output time-step 1 (causal-softmax weighted combination)
    """
    # (1) ONE fused MXU matmul produces everything that is linear in the input:
    #     lane-tile 0: [ sv0 (10) | pad | u = row1 @ (Wq^T Wk) per head (40) | 0 ]
    #     lane-tile 1: [ sv1 (10) | pad | (row0 - row1) tiled per head  (40) | 0 ]
    y = jnp.dot(x_ref[...], w_ref[...], preferred_element_type=jnp.float32)   # (TS, 256)
    t0 = y[:, :LANE]          # lane-tile-aligned slices: no cross-lane shuffles
    t1 = y[:, LANE:]

    # (2) per-head score difference d = s10 - s11: aligned elementwise product of the two
    #     lane-tiles + one 0/1 segment-sum matmul over the 4 lanes of each head group.
    p = t0 * t1
    d = jnp.dot(p, seg_ref[...], preferred_element_type=jnp.float32)          # (TS, NH)

    # (3) causal 2x2 softmax, collapsed exactly:
    #     wei row0 = [1, 0]             -> out0 = sv0
    #     wei row1 = [g, 1-g], g = sigmoid(s10 - s11) -> out1 = sv1 + g*(sv0 - sv1)
    sv0 = t0[:, :NH]
    sv1 = t1[:, :NH]
    m = jnp.maximum(d, 0.0)                       # numerically stable sigmoid
    e1 = jnp.exp(d - m)
    e0 = jnp.exp(-m)
    g = e1 / (e0 + e1)
    o0_ref[...] = sv0
    o1_ref[...] = sv1 + g * (sv0 - sv1)


def pack_weights(wk, wq, wv):
    """Fold all per-head constants into one (8, 256) fused weight + one (128, NH) 0/1
    segment-sum matrix.  Done ONCE outside the jitted hot path.

    Fused-matmul input lane convention: x row = [row0 (4) | row1 (4)] of idy.view(2, 4).
    wk/wq/wv: (NH, out, in) nn.Linear weights.
    """
    wk = np.asarray(wk, np.float32)
    wq = np.asarray(wq, np.float32)
    wv = np.asarray(wv, np.float32)
    W = np.zeros((2 * C, W_LANES), np.float32)
    seg = np.zeros((LANE, NH), np.float32)
    for h in range(NH):
        M = wq[h].T @ wk[h]              # bilinear score form: s1j = row1 @ M @ rowj^T
        wv_sum = wv[h].sum(axis=0)       # folds  sum_d (x @ Wv^T)[d]  into the weight
        W[0:C, h] = wv_sum                         # sv0  (lane-tile 0, lanes 0:10)
        W[C:2 * C, LANE + h] = wv_sum              # sv1  (lane-tile 1, lanes 0:10)
        for c in range(C):
            W[C:2 * C, U_OFF + C * h + c] = M[:, c]        # u = row1 @ M
            W[c, LANE + U_OFF + C * h + c] = 1.0           # +row0
            W[C + c, LANE + U_OFF + C * h + c] = -1.0      # -row1
            seg[U_OFF + C * h + c, h] = 1.0
    return jnp.asarray(W), jnp.asarray(seg)


@jax.jit
def head_forward_batched(xs, w_fused, seg):
    """Fused forward of N independent Head invocations in ONE pallas_call.

    xs: (N, B, H, T) with B == f1 == 2, H == 2*B == 4, T == f1 == 2.
    Returns (N, B, f1, f2): the PyTorch outputs stacked over the N invocations.
    """
    N, B, H, T = xs.shape
    assert T == F1, f"module requires T == f1 == {F1}, got T={T}"
    assert H == 2 * B, "idy.view(B, -1) must produce (B, 4)  =>  H == 2*B"
    assert B == F1, f"kernel layout requires B == f1 == {F1} (so .view(f1, H) is an identity)"

    S = N * B                           # one sample == one idy
    x2 = xs.reshape(S, F1 * C)          # metadata-only: [row0 | row1] per sample

    ts = min(MAX_TILE, _round_up(S, 8))
    s_pad = _round_up(S, ts)
    if s_pad != S:                      # zero rows -> finite garbage, sliced off below
        x2 = jnp.concatenate([x2, jnp.zeros((s_pad - S, F1 * C), x2.dtype)], axis=0)

    o0, o1 = pl.pallas_call(
        head_kernel,
        out_shape=(jax.ShapeDtypeStruct((s_pad, NH), jnp.float32),
                   jax.ShapeDtypeStruct((s_pad, NH), jnp.float32)),
        grid_spec=pltpu.PrefetchScalarGridSpec(
            num_scalar_prefetch=0,
            grid=(s_pad // ts,),
            in_specs=[
                pl.BlockSpec((ts, F1 * C), lambda i: (i, 0)),
                pl.BlockSpec((2 * C, W_LANES), lambda i: (0, 0)),   # constants stay resident
                pl.BlockSpec((LANE, NH), lambda i: (0, 0)),
            ],
            out_specs=[
                pl.BlockSpec((ts, NH), lambda i: (i, 0)),
                pl.BlockSpec((ts, NH), lambda i: (i, 0)),
            ],
        ),
        compiler_params=pltpu.CompilerParams(
            dimension_semantics=("parallel",)),   # v7x: shard sample blocks over both TCs
    )(x2, w_fused, seg)

    out = jnp.stack([o0[:S], o1[:S]], axis=1)     # (S, f1, NH); tiny wrapper-side shuffle
    return out.reshape(N, B, F1, NH)


@jax.jit
def head_forward(x, w_fused, seg):
    """Single module call: x (B, H, T) -> (B, f1, f2), identical to Head.forward."""
    return head_forward_batched(x[None], w_fused, seg)[0]


def head_reference(x, wk, wq, wv):
    """Pure-JAX transcription of the PyTorch forward, for validation only."""
    B, H, T = x.shape
    tril = jnp.tril(jnp.ones((F1, F1), jnp.float32))
    ys = []
    for b in range(B):
        x2 = x[b].reshape(B, -1)
        cols = []
        for h in range(NH):
            k = (x2 @ wk[h].T).reshape(F1, H)
            q = (x2 @ wq[h].T).reshape(F1, H)
            v = (x2 @ wv[h].T).reshape(F1, H)
            s = q @ k.T
            s = jnp.where(tril[:T, :T] == 0, -jnp.inf, s)
            wei = jax.nn.softmax(s, axis=-1)
            cols.append(jnp.sum(wei @ v, axis=-1, keepdims=True))
        ys.append(jnp.concatenate(cols, axis=-1))
    return jnp.stack(ys)


if __name__ == "__main__":
    key = jax.random.PRNGKey(0)
    kx, kb, kk, kq, kv = jax.random.split(key, 5)

    B = 2                        # the module's .view() calls force B == f1 == 2, H == 4, T == 2
    H, T = 2 * B, F1
    N = 64                       # independent Head invocations fused into one pallas_call

    bound = 1.0 / np.sqrt(C)     # nn.Linear default init range
    wk = jax.random.uniform(kk, (NH, C, C), jnp.float32, -bound, bound)
    wq = jax.random.uniform(kq, (NH, C, C), jnp.float32, -bound, bound)
    wv = jax.random.uniform(kv, (NH, C, C), jnp.float32, -bound, bound)
    w_fused, seg = pack_weights(wk, wq, wv)        # packed once, outside jit

    # (a) single module call — exact Head.forward semantics
    x = jax.random.normal(kx, (B, H, T), dtype=jnp.float32)
    out = jax.block_until_ready(head_forward(x, w_fused, seg))
    ref = jax.block_until_ready(head_reference(x, wk, wq, wv))
    assert out.shape == (B, F1, NH), out.shape
    assert np.allclose(np.asarray(out), np.asarray(ref), rtol=1e-3, atol=1e-3), \
        float(np.max(np.abs(np.asarray(out) - np.asarray(ref))))

    # (b) N fused invocations in ONE pallas_call (amortizes launch / DMA / pipeline overhead)
    xs = jax.random.normal(kb, (N, B, H, T), dtype=jnp.float32)
    out_b = jax.block_until_ready(head_forward_batched(xs, w_fused, seg))
    ref_b = jax.block_until_ready(
        jax.vmap(head_reference, in_axes=(0, None, None, None))(xs, wk, wq, wv))
    assert out_b.shape == (N, B, F1, NH), out_b.shape
    assert np.allclose(np.asarray(out_b), np.asarray(ref_b), rtol=1e-3, atol=1e-3), \
        float(np.max(np.abs(np.asarray(out_b) - np.asarray(ref_b))))

    print("KERNEL_OK")
</pallas_src>

<mosaic_0001>
module attributes {stable_mosaic.version = 11 : i64} {
  func.func @head_kernel(%arg0: i32, %arg1: memref<8x8xf32, #tpu.memory_space<vmem>>, %arg2: memref<8x256xf32, #tpu.memory_space<vmem>>, %arg3: memref<128x10xf32, #tpu.memory_space<vmem>>, %arg4: memref<8x10xf32, #tpu.memory_space<vmem>>, %arg5: memref<8x10xf32, #tpu.memory_space<vmem>>) attributes {dimension_semantics = [#tpu.dimension_semantics<parallel>], iteration_bounds = array<i64: 1>, scalar_prefetch = 0 : i64, scratch_operands = 0 : i64, tpu.core_type = #tpu.core_type<tc>, window_params = [{transform_indices = @transform_0, window_bounds = array<i64: 8, 8>}, {pipeline_mode = #tpu.pipeline_mode<synchronous>, transform_indices = @transform_1, window_bounds = array<i64: 8, 256>}, {pipeline_mode = #tpu.pipeline_mode<synchronous>, transform_indices = @transform_2, window_bounds = array<i64: 128, 10>}, {transform_indices = @transform_3, window_bounds = array<i64: 8, 10>}, {transform_indices = @transform_4, window_bounds = array<i64: 8, 10>}]} {
    %c0 = arith.constant 0 : index
    %c0_0 = arith.constant 0 : index
    %0 = vector.load %arg1[%c0, %c0_0] : memref<8x8xf32, #tpu.memory_space<vmem>>, vector<8x8xf32>
    %c0_1 = arith.constant 0 : index
    %c0_2 = arith.constant 0 : index
    %1 = vector.load %arg2[%c0_1, %c0_2] : memref<8x256xf32, #tpu.memory_space<vmem>>, vector<8x256xf32>
    %cst = arith.constant dense<0.000000e+00> : vector<8x256xf32>
    %2 = tpu.matmul %0, %1, %cst {dimension_numbers = #tpu.dot_dimension_numbers<[1], [0], [0], [1], [0, 0, 1, 1], [], []>} : vector<8x8xf32>, vector<8x256xf32>, vector<8x256xf32> -> vector<8x256xf32>
    %3 = vector.extract_strided_slice %2 {offsets = [0, 0], sizes = [8, 128], strides = [1, 1]} : vector<8x256xf32> to vector<8x128xf32>
    %4 = vector.extract_strided_slice %2 {offsets = [0, 128], sizes = [8, 128], strides = [1, 1]} : vector<8x256xf32> to vector<8x128xf32>
    %5 = arith.mulf %3, %4 : vector<8x128xf32>
    %c0_3 = arith.constant 0 : index
    %c0_4 = arith.constant 0 : index
    %6 = vector.load %arg3[%c0_3, %c0_4] : memref<128x10xf32, #tpu.memory_space<vmem>>, vector<128x10xf32>
    %cst_5 = arith.constant dense<0.000000e+00> : vector<8x10xf32>
    %7 = tpu.matmul %5, %6, %cst_5 {dimension_numbers = #tpu.dot_dimension_numbers<[1], [0], [0], [1], [0, 0, 1, 1], [], []>} : vector<8x128xf32>, vector<128x10xf32>, vector<8x10xf32> -> vector<8x10xf32>
    %8 = vector.extract_strided_slice %3 {offsets = [0, 0], sizes = [8, 10], strides = [1, 1]} : vector<8x128xf32> to vector<8x10xf32>
    %9 = vector.extract_strided_slice %4 {offsets = [0, 0], sizes = [8, 10], strides = [1, 1]} : vector<8x128xf32> to vector<8x10xf32>
    %cst_6 = arith.constant 0.000000e+00 : f32
    %10 = vector.broadcast %cst_6 : f32 to vector<8x10xf32>
    %11 = arith.maximumf %7, %10 : vector<8x10xf32>
    %12 = arith.subf %7, %11 : vector<8x10xf32>
    %13 = math.exp %12 : vector<8x10xf32>
    %cst_7 = arith.constant 0.000000e+00 : f32
    %14 = vector.broadcast %cst_7 : f32 to vector<8x10xf32>
    %15 = arith.subf %14, %11 : vector<8x10xf32>
    %16 = math.exp %15 : vector<8x10xf32>
    %17 = arith.addf %16, %13 : vector<8x10xf32>
    %18 = arith.divf %13, %17 : vector<8x10xf32>
    %c0_8 = arith.constant 0 : index
    %c0_9 = arith.constant 0 : index
    %19 = vector.load %arg4[%c0_8, %c0_9] : memref<8x10xf32, #tpu.memory_space<vmem>>, vector<8x10xf32>
    tpu.vector_store %arg4[%c0_8, %c0_9], %8 {strides = array<i32>} : memref<8x10xf32, #tpu.memory_space<vmem>>, vector<8x10xf32>,
    %20 = arith.subf %8, %9 : vector<8x10xf32>
    %21 = arith.mulf %18, %20 : vector<8x10xf32>
    %22 = arith.addf %9, %21 : vector<8x10xf32>
    %c0_10 = arith.constant 0 : index
    %c0_11 = arith.constant 0 : index
    %23 = vector.load %arg5[%c0_10, %c0_11] : memref<8x10xf32, #tpu.memory_space<vmem>>, vector<8x10xf32>
    tpu.vector_store %arg5[%c0_10, %c0_11], %22 {strides = array<i32>} : memref<8x10xf32, #tpu.memory_space<vmem>>, vector<8x10xf32>,
    return
  }
  func.func @transform_0(%arg0: i32) -> (i32, i32) {
    %c0_i32 = arith.constant 0 : i32
    %c0_i32_0 = arith.constant 0 : i32
    return %arg0, %c0_i32 : i32, i32
  }
  func.func @transform_1(%arg0: i32) -> (i32, i32) {
    %c0_i32 = arith.constant 0 : i32
    %c0_i32_0 = arith.constant 0 : i32
    %c0_i32_1 = arith.constant 0 : i32
    return %c0_i32, %c0_i32_0 : i32, i32
  }
  func.func @transform_2(%arg0: i32) -> (i32, i32) {
    %c0_i32 = arith.constant 0 : i32
    %c0_i32_0 = arith.constant 0 : i32
    %c0_i32_1 = arith.constant 0 : i32
    return %c0_i32, %c0_i32_0 : i32, i32
  }
  func.func @transform_3(%arg0: i32) -> (i32, i32) {
    %c0_i32 = arith.constant 0 : i32
    %c0_i32_0 = arith.constant 0 : i32
    return %arg0, %c0_i32 : i32, i32
  }
  func.func @transform_4(%arg0: i32) -> (i32, i32) {
    %c0_i32 = arith.constant 0 : i32
    %c0_i32_0 = arith.constant 0 : i32
    return %arg0, %c0_i32 : i32, i32
  }
}

</mosaic_0001>

<bundles_post_ra>
// kernel: head_forward_batched.1
= control target key start
LH: loop header
LB: loop body
LE: loop exit
PB: predicated region body
PF: predicated region fallthrough
CT: control target
= control target key end

     0   :  { %v291_v2 = vmov 0.0   ;;  %vm19_vm0 = vcmask 64512   ;;  %v292_v4 = vmov 0.0|0.0   ;;  %vm293_vm1 = vmmov 0   ;;  %s384_s1 = inlined_call_operand.vmem [shape: f32[8,256], index: 1, kind: input, shape index: {}]   ;;  %s385_s0 = inlined_call_operand.vmem [shape: f32[8,8], index: 0, kind: input, shape index: {}]   ;;  %s386_s2 = inlined_call_operand.vmem [shape: f32[128,10], index: 2, kind: input, shape index: {}]   ;;  %s387_s3 = inlined_call_operand.vmem [shape: f32[8,10], index: 3, kind: output, shape index: {0}]   ;;  %s388_s4 = inlined_call_operand.vmem [shape: f32[8,10], index: 4, kind: output, shape index: {1}]  }
   0x1   :  { %v18_v0 = vld [vmem:[%s384_s1 + $0x8] sm:$0xff]  ;;  %v17_v1 = vld [vmem:[%s384_s1] sm:$0xff]  ;;  %87 = vmatprep.mubr.f32.mxu0 %v291_v2  ;;  %258 = vmatprep.subr.bf16.mxu1 %v292_v4  ;;  %v97_v7 = vld [vmem:[%s386_s2 + $0x10] sm:$0xff]  ;;  %vm191_vm2 = vcmask 80896  }
   0x2   :  { %v16_v3 = vld [vmem:[%s385_s0] sm:$0xff]  ;;  %23 = vmatprep.subr.mxu0 %v18_v0  ;;  %v96_v6 = vld [vmem:[%s386_s2 + $0x8] sm:$0xff]  ;;  %v98_v9 = vld [vmem:[%s386_s2 + $0x18] sm:$0xff]  ;;  %255 = vmatprep.mubr.msk.f32.mxu1 %vm293_vm1, %v291_v2 }
   0x3   :  { %v95_v5 = vld [vmem:[%s386_s2] sm:$0xff]  ;;  %24 = vmatpush1.msra.mxu0 %v17_v1  ;;  %v262_v10 = vpack.c.bf16 %v98_v9, %v97_v7  ;;  %v100_v12 = vld [vmem:[%s386_s2 + $0x28] sm:$0xff]  ;;  %v101_v14 = vld [vmem:[%s386_s2 + $0x30] sm:$0xff] }
   0x4   :  { %v259_v8 = vpack.c.bf16 %v96_v6, %v95_v5  ;;  %205 = vmatmul.mubr.msk.f32.vlgmr.msra.gmra.mrb[0].mxu0 %vm19_vm0, %v16_v3  ;;  %v99_v11 = vld [vmem:[%s386_s2 + $0x20] sm:$0xff]  ;;  %v102_v15 = vld [vmem:[%s386_s2 + $0x38] sm:$0xff]  ;;  %v104_v18 = vld [vmem:[%s386_s2 + $0x48] sm:$0xff] }
   0x5   :  { %v265_v13 = vpack.c.bf16 %v100_v12, %v99_v11  ;;  %v268_v16 = vpack.c.bf16 %v102_v15, %v101_v14  ;;  %v103_v17 = vld [vmem:[%s386_s2 + $0x40] sm:$0xff]  ;;  %v105_v20 = vld [vmem:[%s386_s2 + $0x50] sm:$0xff]  ;;  %v106_v21 = vld [vmem:[%s386_s2 + $0x58] sm:$0xff] }
   0x6   :  { %260 = vmatpush3.bf16.msra.mxu1 %v259_v8  ;;  %v271_v19 = vpack.c.bf16 %v104_v18, %v103_v17  ;;  %v274_v22 = vpack.c.bf16 %v106_v21, %v105_v20  ;;  %v107_v23 = vld [vmem:[%s386_s2 + $0x60] sm:$0xff]  ;;  %v108_v24 = vld [vmem:[%s386_s2 + $0x68] sm:$0xff]  ;;  %v109_v26 = vld [vmem:[%s386_s2 + $0x70] sm:$0xff] }
   0x7   :  { %261 = vmatprep.subr.bf16.mxu1 %v292_v4  ;;  %v277_v25 = vpack.c.bf16 %v108_v24, %v107_v23  ;;  %v110_v27 = vld [vmem:[%s386_s2 + $0x78] sm:$0xff] }
   0x8   :  { %v280_v28 = vpack.c.bf16 %v110_v27, %v109_v26 }
   0xa   :  { %263 = vmatpush3.bf16.msra.mxu1 %v262_v10 }
   0xb   :  { %264 = vmatprep.subr.bf16.mxu1 %v292_v4 }
   0xe   :  { %266 = vmatpush3.bf16.msra.mxu1 %v265_v13 }
   0xf   :  { %267 = vmatprep.subr.bf16.mxu1 %v292_v4 }
  0x12   :  { %269 = vmatpush3.bf16.msra.mxu1 %v268_v16 }
  0x13   :  { %270 = vmatprep.subr.bf16.mxu1 %v292_v4 }
  0x16   :  { %272 = vmatpush3.bf16.msra.mxu1 %v271_v19 }
  0x17   :  { %273 = vmatprep.subr.bf16.mxu1 %v292_v4 }
  0x1a   :  { %275 = vmatpush3.bf16.msra.mxu1 %v274_v22 }
  0x1b   :  { %276 = vmatprep.subr.bf16.mxu1 %v292_v4 }
  0x1e   :  { %278 = vmatpush3.bf16.msra.mxu1 %v277_v25 }
  0x1f   :  { %279 = vmatprep.subr.bf16.mxu1 %v292_v4 }
  0x22   :  { %281 = vmatpush3.bf16.msra.mxu1 %v280_v28 }
  0xd7   :  { %v89_v29 = vpop.f32.mrb[0].mxu0 }
  0xd8   :  { %192 = vst.msk [vmem:[%s387_s3] sm:$0xff] %vm191_vm2, %v89_v29  ;;  %v91_v30 = vpop.f32.mrb[1].mxu0 }
  0xd9   :  { %v94_v31 = vmul.f32 %v91_v30, %v89_v29  ;;  %v193_v32 = vsub.f32 %v89_v29, %v91_v30 }
  0xdb   :  { %256 = vmatmul.mubr.f32.vlgmr.msra.gmra.mrb[0].mxu1 %v94_v31 }
 0x1ae   :  { %v177_v33 = vpop.f32.mrb[0].mxu1 }
 0x1af   :  { %v181_v34 = vmax.f32 %v177_v33, 0.0  ;;  %v257_v35 = vpop.f32.mrb[1].mxu1 }
 0x1b1   :  { %v182_v36 = vsub.f32 %v177_v33, %v181_v34  ;;  %v185_v37 = vsub.f32 0.0, %v181_v34 }
 0x1b3   :  { %v183_v38 = vmul.f32 1.442695, %v182_v36  ;;  %v186_v39 = vmul.f32 1.442695, %v185_v37 }
 0x1b5   :  { %285 = vpow2.f32 %v183_v38 }
 0x1b6   :  { %287 = vpow2.f32 %v186_v39 }
 0x1bf   :  { %v286_v40 = vpop.eup %285 }
 0x1c0   :  { %v288_v41 = vpop.eup %287 }
 0x1c1   :  { %v188_v42 = vadd.f32 %v288_v41, %v286_v40 }
 0x1c3   :  { %289 = vrcp.f32 %v188_v42 }
 0x1cd   :  { %v290_v43 = vpop.eup %289 }
 0x1ce   :  { %v190_v44 = vmul.f32 %v290_v43, %v286_v40 }
 0x1d0   :  { %v194_v45 = vmul.f32 %v193_v32, %v190_v44 }
 0x1d2   :  { %v195_v46 = vadd.f32 %v194_v45, %v91_v30 }
 0x1d4   :  { %196 = vst.msk [vmem:[%s388_s4] sm:$0xff] %vm191_vm2, %v195_v46 }

</bundles_post_ra>
